<compile_context>
chip_gen: v7x
topology: tpu7x:2x2x1
jax: 0.10.0
libtpu: 0.0.40
codegen_flags: <defaults>
</compile_context>

<pallas_src>
import functools

import jax
import jax.numpy as jnp
from jax import lax
from jax.experimental import pallas as pl
from jax.experimental.pallas import tpu as pltpu


def _bias_ln_act_kernel(*refs, eps, n_elem, affine, relu):
    """Fused bias-add + per-sample LayerNorm + affine + ReLU on a (TB, R, L) block."""
    if affine:
        x_ref, b_ref, g_ref, be_ref, o_ref = refs
    else:
        x_ref, b_ref, o_ref = refs

    # (R, 1) sublane-major parameter tiles: broadcasting along the lane (L) axis
    # is a free splat (no XLU relayout). Hoisted once per grid step.
    bias = b_ref[...].astype(jnp.float32)            # (R, 1)
    if affine:
        gamma = g_ref[...].astype(jnp.float32)       # (R, 1)
        beta = be_ref[...].astype(jnp.float32)       # (R, 1)

    x = x_ref[...].astype(jnp.float32) + bias[None]  # (TB, R, L)

    # --- fused single-pass statistics: sum and sum-of-squares per sample -----
    s1 = jnp.sum(jnp.sum(x, axis=2, keepdims=True), axis=1, keepdims=True)
    s2 = jnp.sum(jnp.sum(x * x, axis=2, keepdims=True), axis=1, keepdims=True)
    inv_n = 1.0 / float(n_elem)
    inv_nm1 = 1.0 / float(max(n_elem - 1, 1))        # guard n==1
    mean = s1 * inv_n                                # (TB,1,1)
    var = (s2 - float(n_elem) * mean * mean) * inv_nm1   # Bessel (torch .std default)
    std = jnp.sqrt(jnp.maximum(var, 0.0))
    # one reciprocal + per-element multiply instead of a vector divide
    inv_std = pl.reciprocal(std + eps, approx=False)     # (TB,1,1)

    z = (x - mean) * inv_std
    if affine:
        z = z * gamma[None] + beta[None]
    if relu:
        z = jnp.maximum(z, 0.0)
    o_ref[...] = z.astype(o_ref.dtype)


def _fold_factor(c, hw):
    """Largest power-of-two f with c*f <= 8, hw % f == 0 and (hw//f) % 128 == 0."""
    best, f = 1, 2
    while c * f <= 8:
        if hw % f == 0 and (hw // f) % 128 == 0:
            best = f
        f *= 2
    return best


def _samples_per_step(n, rows, lanes):
    """Samples per grid step: amortize per-step overhead, keep the double-buffered
    in+out block <= ~2 MiB, leave >= 2 grid steps whenever N >= 2 (v7x 2 TCs)."""
    bytes_per_sample = 2 * rows * lanes * 4
    tb = 1 if n < 2 else max(1, min(8, n // 2))
    tb = max(1, min(tb, (2 * 1024 * 1024) // max(bytes_per_sample, 1)))
    return tb


def fused_bias_layernorm_relu(y, bias, gamma=None, beta=None, *,
                              eps=1e-5, affine=True, relu=True):
    """y: (N, C, HW) conv output (pre-bias). Returns (N, C, HW)."""
    N, C, HW = y.shape
    n_elem = C * HW

    f = _fold_factor(C, HW)                 # sublane-density fold (free reshape)
    R, L = C * f, HW // f
    y2 = y.reshape(N, R, L)

    def per_row(p):                          # per-channel param -> (R,1) tile
        return jnp.repeat(p.reshape(C, 1).astype(jnp.float32), f, axis=0)

    tb = _samples_per_step(N, R, L)
    n_pad = -(-N // tb) * tb
    if n_pad != N:
        y2 = jnp.pad(y2, ((0, n_pad - N), (0, 0), (0, 0)))

    args = [y2, per_row(bias)]
    sample_spec = pl.BlockSpec((tb, R, L), lambda i: (i, 0, 0))
    param_spec = pl.BlockSpec((R, 1), lambda i: (0, 0))
    in_specs = [sample_spec, param_spec]
    if affine:
        args += [per_row(gamma), per_row(beta)]
        in_specs += [param_spec, param_spec]

    kern = functools.partial(_bias_ln_act_kernel, eps=eps, n_elem=n_elem,
                             affine=affine, relu=relu)
    out = pl.pallas_call(
        kern,
        out_shape=jax.ShapeDtypeStruct((n_pad, R, L), y.dtype),
        grid_spec=pltpu.PrefetchScalarGridSpec(
            num_scalar_prefetch=0,
            grid=(n_pad // tb,),
            in_specs=in_specs,
            out_specs=pl.BlockSpec((tb, R, L), lambda i: (i, 0, 0)),
        ),
        compiler_params=pltpu.CompilerParams(
            dimension_semantics=("parallel",)),
    )(*args)
    return out[:N].reshape(N, C, HW)


def conv2d_block_forward(x, w, b, gamma=None, beta=None, *, stride=1, padding=0,
                         eps=1e-5, affine=True, relu=True):
    """Conv2dBlock(pad_type='zero', norm='ln', activation='relu') forward.
    x: (N, Cin, H, W); w: (Cout, Cin, kh, kw); b/gamma/beta: (Cout,)."""
    N, _, _, _ = x.shape
    Cout = w.shape[0]
    y = lax.conv_general_dilated(
        x, w, window_strides=(stride, stride),
        padding=[(padding, padding), (padding, padding)],
        dimension_numbers=("NCHW", "OIHW", "NCHW"),
        precision=lax.Precision.HIGHEST)        # faithful f32 conv on the MXU
    _, _, Ho, Wo = y.shape
    z = fused_bias_layernorm_relu(y.reshape(N, Cout, Ho * Wo), b, gamma, beta,
                                  eps=eps, affine=affine, relu=relu)
    return z.reshape(N, Cout, Ho, Wo)


def conv2d_block_ref(x, w, b, gamma, beta, *, stride=1, padding=0,
                     eps=1e-5, affine=True, relu=True):
    """Pure-JAX reference mirroring the PyTorch Conv2dBlock forward."""
    y = lax.conv_general_dilated(
        x, w, window_strides=(stride, stride),
        padding=[(padding, padding), (padding, padding)],
        dimension_numbers=("NCHW", "OIHW", "NCHW"),
        precision=lax.Precision.HIGHEST)
    y = y + b.reshape(1, -1, 1, 1)
    nb = y.shape[0]
    flat = y.reshape(nb, -1)
    mean = flat.mean(axis=1).reshape(nb, 1, 1, 1)
    std = jnp.sqrt(flat.var(axis=1, ddof=1)).reshape(nb, 1, 1, 1)
    z = (y - mean) / (std + eps)
    if affine:
        z = z * gamma.reshape(1, -1, 1, 1) + beta.reshape(1, -1, 1, 1)
    if relu:
        z = jnp.maximum(z, 0.0)
    return z


if __name__ == "__main__":
    key = jax.random.PRNGKey(0)
    kx, kw, kb, kg = jax.random.split(key, 4)

    N, Cin, H, W = 2, 4, 16, 16
    Cout, ksz, stride, padding = 4, 3, 1, 1     # 'same' zero padding

    x = jax.random.normal(kx, (N, Cin, H, W), dtype=jnp.float32)
    w = 0.2 * jax.random.normal(kw, (Cout, Cin, ksz, ksz), dtype=jnp.float32)
    b = 0.1 * jax.random.normal(kb, (Cout,), dtype=jnp.float32)
    gamma = jax.random.uniform(kg, (Cout,), dtype=jnp.float32)  # torch .uniform_()
    beta = jnp.zeros((Cout,), dtype=jnp.float32)

    y = conv2d_block_forward(x, w, b, gamma, beta, stride=stride, padding=padding,
                             eps=1e-5, affine=True, relu=True)
    y = jax.block_until_ready(y)

    y_ref = conv2d_block_ref(x, w, b, gamma, beta, stride=stride, padding=padding,
                             eps=1e-5, affine=True, relu=True)
    assert y.shape == (N, Cout, H, W)
    # tight check; the fused sum/sumsq statistics cost a few f32 ulps vs the
    # two-pass reference variance.
    assert jnp.allclose(y, y_ref, atol=2e-5, rtol=2e-5), \
        float(jnp.max(jnp.abs(y - y_ref)))
    print("KERNEL_OK")
</pallas_src>

<mosaic_0001>
module attributes {stable_mosaic.version = 11 : i64} {
  func.func @_bias_ln_act_kernel(%arg0: i32, %arg1: memref<1x8x128xf32, #tpu.memory_space<vmem>>, %arg2: memref<8x1xf32, #tpu.memory_space<vmem>>, %arg3: memref<8x1xf32, #tpu.memory_space<vmem>>, %arg4: memref<8x1xf32, #tpu.memory_space<vmem>>, %arg5: memref<1x8x128xf32, #tpu.memory_space<vmem>>) attributes {dimension_semantics = [#tpu.dimension_semantics<parallel>], iteration_bounds = array<i64: 2>, scalar_prefetch = 0 : i64, scratch_operands = 0 : i64, tpu.core_type = #tpu.core_type<tc>, window_params = [{transform_indices = @transform_0, window_bounds = array<i64: 1, 8, 128>}, {pipeline_mode = #tpu.pipeline_mode<synchronous>, transform_indices = @transform_1, window_bounds = array<i64: 8, 1>}, {pipeline_mode = #tpu.pipeline_mode<synchronous>, transform_indices = @transform_2, window_bounds = array<i64: 8, 1>}, {pipeline_mode = #tpu.pipeline_mode<synchronous>, transform_indices = @transform_3, window_bounds = array<i64: 8, 1>}, {transform_indices = @transform_4, window_bounds = array<i64: 1, 8, 128>}]} {
    %c0 = arith.constant 0 : index
    %c0_0 = arith.constant 0 : index
    %0 = vector.load %arg2[%c0, %c0_0] : memref<8x1xf32, #tpu.memory_space<vmem>>, vector<8x1xf32>
    %c0_1 = arith.constant 0 : index
    %c0_2 = arith.constant 0 : index
    %1 = vector.load %arg3[%c0_1, %c0_2] : memref<8x1xf32, #tpu.memory_space<vmem>>, vector<8x1xf32>
    %c0_3 = arith.constant 0 : index
    %c0_4 = arith.constant 0 : index
    %2 = vector.load %arg4[%c0_3, %c0_4] : memref<8x1xf32, #tpu.memory_space<vmem>>, vector<8x1xf32>
    %c0_5 = arith.constant 0 : index
    %c0_6 = arith.constant 0 : index
    %c0_7 = arith.constant 0 : index
    %3 = vector.load %arg1[%c0_5, %c0_6, %c0_7] : memref<1x8x128xf32, #tpu.memory_space<vmem>>, vector<1x8x128xf32>
    %4 = vector.shape_cast %0 : vector<8x1xf32> to vector<1x8x1xf32>
    %5 = vector.broadcast %4 : vector<1x8x1xf32> to vector<1x8x128xf32>
    %6 = arith.addf %3, %5 : vector<1x8x128xf32>
    %cst = arith.constant dense<0.000000e+00> : vector<1x8xf32>
    %7 = vector.multi_reduction <add>, %6, %cst [2] : vector<1x8x128xf32> to vector<1x8xf32>
    %8 = vector.shape_cast %7 : vector<1x8xf32> to vector<1x8x1xf32>
    %cst_8 = arith.constant dense<0.000000e+00> : vector<1x1xf32>
    %9 = vector.multi_reduction <add>, %8, %cst_8 [1] : vector<1x8x1xf32> to vector<1x1xf32>
    %10 = vector.shape_cast %9 : vector<1x1xf32> to vector<1x1x1xf32>
    %11 = arith.mulf %6, %6 : vector<1x8x128xf32>
    %cst_9 = arith.constant dense<0.000000e+00> : vector<1x8xf32>
    %12 = vector.multi_reduction <add>, %11, %cst_9 [2] : vector<1x8x128xf32> to vector<1x8xf32>
    %13 = vector.shape_cast %12 : vector<1x8xf32> to vector<1x8x1xf32>
    %cst_10 = arith.constant dense<0.000000e+00> : vector<1x1xf32>
    %14 = vector.multi_reduction <add>, %13, %cst_10 [1] : vector<1x8x1xf32> to vector<1x1xf32>
    %15 = vector.shape_cast %14 : vector<1x1xf32> to vector<1x1x1xf32>
    %cst_11 = arith.constant 9.765625E-4 : f32
    %16 = vector.broadcast %cst_11 : f32 to vector<1x1x1xf32>
    %17 = arith.mulf %10, %16 : vector<1x1x1xf32>
    %cst_12 = arith.constant 1.024000e+03 : f32
    %18 = vector.broadcast %cst_12 : f32 to vector<1x1x1xf32>
    %19 = arith.mulf %18, %17 : vector<1x1x1xf32>
    %20 = arith.mulf %19, %17 : vector<1x1x1xf32>
    %21 = arith.subf %15, %20 : vector<1x1x1xf32>
    %cst_13 = arith.constant 9.77517105E-4 : f32
    %22 = vector.broadcast %cst_13 : f32 to vector<1x1x1xf32>
    %23 = arith.mulf %21, %22 : vector<1x1x1xf32>
    %cst_14 = arith.constant 0.000000e+00 : f32
    %24 = vector.broadcast %cst_14 : f32 to vector<1x1x1xf32>
    %25 = arith.maximumf %23, %24 : vector<1x1x1xf32>
    %26 = math.sqrt %25 : vector<1x1x1xf32>
    %cst_15 = arith.constant 9.99999974E-6 : f32
    %27 = vector.broadcast %cst_15 : f32 to vector<1x1x1xf32>
    %28 = arith.addf %26, %27 : vector<1x1x1xf32>
    %29 = tpu.reciprocal %28 : vector<1x1x1xf32> -> vector<1x1x1xf32>
    %30 = vector.broadcast %17 : vector<1x1x1xf32> to vector<1x8x128xf32>
    %31 = arith.subf %6, %30 : vector<1x8x128xf32>
    %32 = vector.broadcast %29 : vector<1x1x1xf32> to vector<1x8x128xf32>
    %33 = arith.mulf %31, %32 : vector<1x8x128xf32>
    %34 = vector.shape_cast %1 : vector<8x1xf32> to vector<1x8x1xf32>
    %35 = vector.broadcast %34 : vector<1x8x1xf32> to vector<1x8x128xf32>
    %36 = arith.mulf %33, %35 : vector<1x8x128xf32>
    %37 = vector.shape_cast %2 : vector<8x1xf32> to vector<1x8x1xf32>
    %38 = vector.broadcast %37 : vector<1x8x1xf32> to vector<1x8x128xf32>
    %39 = arith.addf %36, %38 : vector<1x8x128xf32>
    %cst_16 = arith.constant 0.000000e+00 : f32
    %40 = vector.broadcast %cst_16 : f32 to vector<1x8x128xf32>
    %41 = arith.maximumf %39, %40 : vector<1x8x128xf32>
    %c0_17 = arith.constant 0 : index
    %c0_18 = arith.constant 0 : index
    %c0_19 = arith.constant 0 : index
    %42 = vector.load %arg5[%c0_17, %c0_18, %c0_19] : memref<1x8x128xf32, #tpu.memory_space<vmem>>, vector<1x8x128xf32>
    tpu.vector_store %arg5[%c0_17, %c0_18, %c0_19], %41 {strides = array<i32>} : memref<1x8x128xf32, #tpu.memory_space<vmem>>, vector<1x8x128xf32>,
    return
  }
  func.func @transform_0(%arg0: i32) -> (i32, i32, i32) {
    %c0_i32 = arith.constant 0 : i32
    %c0_i32_0 = arith.constant 0 : i32
    %c0_i32_1 = arith.constant 0 : i32
    return %arg0, %c0_i32, %c0_i32_0 : i32, i32, i32
  }
  func.func @transform_1(%arg0: i32) -> (i32, i32) {
    %c0_i32 = arith.constant 0 : i32
    %c0_i32_0 = arith.constant 0 : i32
    %c0_i32_1 = arith.constant 0 : i32
    return %c0_i32, %c0_i32_0 : i32, i32
  }
  func.func @transform_2(%arg0: i32) -> (i32, i32) {
    %c0_i32 = arith.constant 0 : i32
    %c0_i32_0 = arith.constant 0 : i32
    %c0_i32_1 = arith.constant 0 : i32
    return %c0_i32, %c0_i32_0 : i32, i32
  }
  func.func @transform_3(%arg0: i32) -> (i32, i32) {
    %c0_i32 = arith.constant 0 : i32
    %c0_i32_0 = arith.constant 0 : i32
    %c0_i32_1 = arith.constant 0 : i32
    return %c0_i32, %c0_i32_0 : i32, i32
  }
  func.func @transform_4(%arg0: i32) -> (i32, i32, i32) {
    %c0_i32 = arith.constant 0 : i32
    %c0_i32_0 = arith.constant 0 : i32
    %c0_i32_1 = arith.constant 0 : i32
    return %arg0, %c0_i32, %c0_i32_0 : i32, i32, i32
  }
}

</mosaic_0001>

<bundles_post_ra>
// kernel: tpu_custom_call.1
= control target key start
LH: loop header
LB: loop body
LE: loop exit
PB: predicated region body
PF: predicated region fallthrough
CT: control target
= control target key end

     0   :  { %9 = vsyncpa [#allocation3], 0  ;;  %s580_s0 = inlined_call_operand.vmem [shape: f32[2,8,128], index: 0, kind: input, shape index: {}]   ;;  %s581_s1 = inlined_call_operand.vmem [shape: f32[8,1], index: 1, kind: input, shape index: {}]   ;;  %s582_s2 = inlined_call_operand.vmem [shape: f32[8,1], index: 2, kind: input, shape index: {}]   ;;  %s583_s3 = inlined_call_operand.vmem [shape: f32[8,1], index: 3, kind: input, shape index: {}]   ;;  %s584_s4 = inlined_call_operand.hbm [shape: f32[2,8,128], index: 4, kind: output, shape index: {}]  }
   0x1   :  { %11 = vsyncpa [#allocation3 + $0x1], 0  ;;  %s471_s15 = smov 0   ;;  %s473_s16 = smov 0  }
   0x2   :  { %s475_s17 = smov 0   ;;  %s477_s18 = smov 0  }
   0x3 LB: > { %s492_s19 = sadd.s32 4294967295, %s442_s18   ;;  %s324_s20 = sadd.s32 4294967294, %s442_s18   ;;  %s442_s18 = sphi %s477_s18, %s590_s18   ;;  %s438_s17 = sphi %s475_s17, %s589_s17   ;;  %s434_s16 = sphi %s473_s16, %s588_s16   ;;  %s430_s15 = sphi %s471_s15, %s587_s15  }
   0x4   : > { %s496_s21 = sadd.s32 1, %s442_s18   ;;  %s113_s22 = sadd.s32 1, %s438_s17 }
   0x5   : > { %s110_s23 = ssub.s32 %s442_s18, %s496_s21  ;;  %p123_p0 = scmp.ne.s32.totalorder %s438_s17, %s434_s16 }
   0x6   : > { %p111_p1 = scmp.eq.s32.totalorder %s110_s23, 0  ;;  %p124_p2 = scmp.eq.s32.totalorder %s492_s19, 1 }
   0x7   : > { %p129_p3 = scmp.ne.s32.totalorder %s434_s16, %s430_s15  ;;  %p130_p4 = scmp.eq.s32.totalorder %s324_s20, 1 }
   0x8   : > { %s507_s24 = scalar_select %p111_p1, %s438_s17, %s113_s22  }
   0x9   : > { %p509_p5 = por %p124_p2, %p123_p0  ;;  %p513_p6 = por %p130_p4, %p129_p3 }
   0xa   : > { %p327_p7 = scmp.ge.s32.totalorder %s442_s18, 1  ;;  %p164_p8 = scmp.lt.s32.totalorder %s442_s18, 3 }
   0xc   : > { %p165_p9 = pnand %p327_p7, %p164_p8 }
   0xd   : > { %v193_v0 = vld [vmem:[%s581_s1] sm:$0xff] (!%p165_p9)  ;;  %v444_v1 = vmov (!%p165_p9), 0   ;;  %p189_p10 = scmp.lt.s32.totalorder (!%p165_p9), %s492_s19, 1  ;;  %s186_s12 = sand.u32 (!%p165_p9), 1, %s434_s16  }
   0xe   : > { %168 = sbr.rel (%p165_p9) target bundleno = 361 (0x169), region = 36  ;;  %374 = vset.pattern.permute.xlu0 (!%p165_p9), %v444_v1  ;;  %375 = vset.pattern.permute.xlu1 (!%p165_p9), %v444_v1  ;;  %v194_v6 = vld [vmem:[%s582_s2] sm:$0xff] (!%p165_p9)  ;;  %s328_s13 = sshll.u32 (!%p165_p9), %s186_s12, 3 }
   0xf   : > { %199 = vperm.xlu0 (!%p165_p9), %374, %v193_v0   ;;  %v195_v7 = vld [vmem:[%s583_s3] sm:$0xff] (!%p165_p9)  ;;  %s331_s14 = sshll.u32 (!%p165_p9), %s492_s19, 7  ;;  %s188_s20 = scalar_lea.vmem (!%p165_p9), [#allocation2], %s328_s13 }
  0x10   : > { %s265_s22 = sshll.u32 (!%p165_p9), %s188_s20, 4  ;;  %s538_s28 = scalar_lea.hbm (!%p165_p9), %s584_s4, %s331_s14  ;;  %s540_s22 = int_to_ptr.vmem [resolvable:$true] %s265_s22 }
  0x15   : > { %s190_s29 = scalar_select %p189_p10, %s492_s19, 1 }
  0x16   : > { %s445_s19 = smov [#allocation2]  }
  0x17   : > { %s329_s30 = sshll.u32 %s190_s29, 3  ;;  %s252_s29 = scalar_lea.sflag [#allocation3], %s186_s12 }
  0x18   : > { %s192_s7 = scalar_lea.vmem %s580_s0, %s329_s30  ;;  %s380_s30 = scalar_lea.vmem %s540_s22, 128 }
  0x19   : > { %v196_v2 = vld [vmem:[%s192_s7] sm:$0xff]  ;;  %p381_p11 = scmp.ne.s32.totalorder %s540_s22, %s380_s30  ;;  %s384_s5 = sshll.u32 %s445_s19, 4  ;;  %s385_s5 = int_to_ptr.vmem [resolvable:$false] %s384_s5 }
  0x1a   : > { %s386_s6 = scalar_lea.vmem %s385_s5, 256  ;;  %p387_p0 = scmp.lt.s32.totalorder %s540_s22, %s385_s5 }
  0x1b   : > { %p382_p12 = pnand %p381_p11, %p509_p5  ;;  %p388_p1 = scmp.lt.s32.totalorder %s386_s6, %s380_s30 }
  0x1d   : > { %p383_p13 = pneg %p382_p12  ;;  %p389_p2 = por %p388_p1, %p387_p0 }
  0x1f   : > { %p390_p3 = pnand %p389_p2, %p383_p13 }
  0x8e   : > { %v200_v3 = vpop.permute.xlu0 %199 }
  0x8f   : > { %v202_v4 = vadd.f32 %v200_v3, %v196_v2 }
  0x91   : > { %203 = vadd.xlane.f32.xlu0 %v202_v4  ;;  %v211_v5 = vmul.f32 %v202_v4, %v202_v4 }
  0x93   : > { %212 = vadd.xlane.f32.xlu1 %v211_v5 }
  0xa4   : > { %239 = vperm.xlu1 %375, %v194_v6  }
  0xa8   : > { %245 = vperm.xlu1 %375, %v195_v7  }
 0x11e   : > { %v204_v8 = vpop.xlane.xlu0 %203 }
 0x11f   : > { %v205_v9 = vrot.slane %v204_v8, 4 }
 0x120   : > { %v213_v10 = vpop.xlane.xlu1 %212 }
 0x121   : > { %v206_v11 = vadd.f32 %v205_v9, %v204_v8  ;;  %v214_v12 = vrot.slane %v213_v10, 4 }
 0x123   : > { %v207_v13 = vrot.slane %v206_v11, 2  ;;  %v215_v14 = vadd.f32 %v214_v12, %v213_v10 }
 0x124   : > { %v240_v34 = vpop.permute.xlu1 %239 }
 0x125   : > { %v208_v15 = vadd.f32 %v207_v13, %v206_v11  ;;  %v216_v16 = vrot.slane %v215_v14, 2 }
 0x127   : > { %v209_v17 = vrot.slane %v208_v15, 1  ;;  %v217_v18 = vadd.f32 %v216_v16, %v215_v14 }
 0x128   : > { %v246_v39 = vpop.permute.xlu1 %245 }
 0x129   : > { %v210_v19 = vadd.f32 %v209_v17, %v208_v15  ;;  %v218_v21 = vrot.slane %v217_v18, 1 }
 0x12b   : > { %v220_v20 = vmul.f32 0.0009765625, %v210_v19  ;;  %v219_v24 = vadd.f32 %v218_v21, %v217_v18 }
 0x12d   : > { %v221_v22 = vmul.f32 1024.0, %v220_v20  ;;  %v235_v35 = vsub.f32 %v202_v4, %v220_v20 }
 0x12f   : > { %v222_v23 = vmul.f32 %v221_v22, %v220_v20 }
 0x131   : > { %v223_v25 = vsub.f32 %v219_v24, %v222_v23 }
 0x133   : > { %v224_v26 = vmul.f32 0.0009775171, %v223_v25 }
 0x135   : > { %v225_v27 = vmax.f32 %v224_v26, 0.0 }
 0x137   : > { %376 = vrsqrt.f32 %v225_v27  ;;  %vm228_vm0 = vcmp.eq.f32.partialorder %v225_v27, inf  ;;  %v231_v30 = vand.u32 2147483648, %v225_v27  ;;  %vm230_vm1 = vcmp.eq.f32.partialorder %v225_v27, 0.0 }
 0x141   : > { %v377_v28 = vpop.eup %376 }
 0x142   : > { %v227_v29 = vmul.f32 %v377_v28, %v225_v27 }
 0x144   : > { %v229_v31 = vsel %vm228_vm0, %v225_v27, %v227_v29 }
 0x145   : > { %v232_v32 = vsel %vm230_vm1, %v231_v30, %v229_v31 }
 0x146   : > { %v233_v33 = vadd.f32 1e-05, %v232_v32 }
 0x148   : > { %378 = vrcp.f32 %v233_v33 }
 0x152   : > { %v379_v36 = vpop.eup %378 }
 0x153   : > { %v236_v37 = vmul.f32 %v379_v36, %v235_v35 }
 0x155   : > { %v242_v38 = vmul.f32 %v240_v34, %v236_v37 }
 0x157   : > { %v248_v40 = vadd.f32 %v246_v39, %v242_v38 }
 0x159   : > { %v249_v41 = vmax.f32 %v248_v40, 0.0 }
 0x15b   : > { %250 = vst [vmem:[%s188_s20] sm:$0xff] %v249_v41 }
 0x15c   : > { %393 = shalt.err (!%p390_p3)
}
 0x15d   : > { %s394_s7 = scalar_lea.hbm %s538_s28, 128  ;;  %s398_s10 = scalar_lea.hbm %s584_s4, 256 }
 0x15e   : > { %p395_p4 = scmp.ne.s32.totalorder %s538_s28, %s394_s7  ;;  %p399_p9 = scmp.lt.u32.totalorder %s538_s28, %s584_s4 }
 0x15f   : > { %p400_p10 = scmp.lt.u32.totalorder %s398_s10, %s394_s7  ;;  %p402_p12 = scmp.lt.u32.totalorder %s394_s7, %s538_s28 }
 0x160   : > { %p396_p7 = pnand %p395_p4, %p509_p5 }
 0x161   : > { %p401_p11 = por %p400_p10, %p399_p9 }
 0x162   : > { %p397_p8 = pneg %p396_p7 }
 0x163   : > { %p403_p13 = por %p402_p12, %p401_p11 }
 0x165   : > { %p404_p0 = pnand %p403_p13, %p397_p8 }
 0x167   : > { %407 = shalt.err (!%p404_p0)
}
 0x168   : > { %334 = dma.vmem_to_hbm [thread:$0]  (%p509_p5), %s540_s22, 128, %s538_s28, %s252_s29  }
 0x169 PF: > { %p340_p1 = scmp.ge.s32.totalorder %s442_s18, 2  ;;  %s277_s13 = sand.u32 1, %s430_s15  }
 0x16a   : > { %s278_s14 = scalar_lea.sflag [#allocation3], %s277_s13 }
 0x16b   : > { %p337_p2 = pnand %p340_p1, %p513_p6 }
 0x16d   : > { %425 = dma.done.wait (!%p337_p2), %s278_s14, 128  }
 0x16e   : > { %427 = vsyncadd (!%p337_p2), %s278_s14, 4294967168  ;;  %p14_p3 = scmp.ge.s32.totalorder %s496_s21, 4   ;;  %s587_s15 = smov %s434_s16 }
 0x16f   : > { %s588_s16 = smov %s438_s17  ;;  %s589_s17 = smov %s507_s24 }
 0x170   : > { %s590_s18 = smov %s496_s21  ;;  %16 = sbr.rel (!%p14_p3) target bundleno = 3 (0x3), region = 71 }
 0x177   :  { %283 = vsyncpa [#allocation3], 1 }
 0x178   :  { %285 = vsyncpa [#allocation3 + $0x1], 1 }

</bundles_post_ra>
